<compile_context>
chip_gen: v7x
topology: tpu7x:2x2x1
jax: 0.10.0
libtpu: 0.0.40
codegen_flags: <defaults>
</compile_context>

<pallas_src>
import functools

import jax
import jax.numpy as jnp
from jax.experimental import pallas as pl
from jax.experimental.pallas import tpu as pltpu


def _mish(x):
    # mish(x) = x * tanh(softplus(x)); jax.nn.softplus is numerically stable.
    # TODO(synk): if a bundle dump shows the EUP slot binding, rewrite as
    # e = exp(min(x, 20)); t = (1+e)**2; x * (t-1) * pl.reciprocal(t+1, approx=True)
    return x * jnp.tanh(jax.nn.softplus(x))


def _output_se_kernel(x_ref, w1p_ref, b1p_ref, w2_ref, b2_ref,
                      wm_ref, bm_ref, o_ref, *, cr_pad):
    x = x_ref[...]                                      # (Cin, ts), native dtype

    # Fused [W1 ; Wp] @ x + [b1 ; bp]  (both GEMMs share RHS x).  Biases are
    # pre-cast to f32 in the wrapper so no per-step astype churn here.
    hp = jnp.dot(w1p_ref[...], x, preferred_element_type=jnp.float32)
    hp = hp + b1p_ref[...]                              # (cr_pad + Cout, ts) f32

    # cr_pad is a multiple of 8, so both slices land on f32 sublane tiles.
    h = _mish(hp[:cr_pad, :])                           # SE hidden   (cr_pad, ts)
    p = hp[cr_pad:, :]                                  # proj branch (Cout,   ts)

    s = jnp.dot(w2_ref[...], h.astype(w2_ref.dtype),
                preferred_element_type=jnp.float32)
    s = jax.nn.sigmoid(s + b2_ref[...])                 # (Cin, ts) f32

    # SE gate in the input dtype: no full-tile f32 upcast of x for bf16 inputs.
    g = s.astype(x_ref.dtype) * x                       # (Cin, ts)

    m = jnp.dot(wm_ref[...], g, preferred_element_type=jnp.float32)
    m = _mish(m + bm_ref[...])                          # (Cout, ts) f32

    # Lane-dense store: last dim is the spatial tile (multiple of 128 lanes).
    o_ref[...] = (m + p).astype(o_ref.dtype)


def _round_up(x, m):
    return ((x + m - 1) // m) * m


def _vmem_budget_bytes():
    """Generation-aware VMEM budget (~3/4 of physical, capped at 96 MiB)."""
    try:
        cap = int(pltpu.get_tpu_info().vmem_capacity_bytes)
    except Exception:
        cap = 64 * 2 ** 20          # conservative fallback: v7x per-TC VMEM
    return int(min((cap * 3) // 4, 96 * 2 ** 20))


def _pick_tile_pixels(target, hw, n_batch, cin, cr_pad, cout,
                      x_itemsize, w_itemsize, budget_bytes):
    """Largest spatial tile (multiple of 128 lanes) fitting the VMEM budget.

    Byte estimates account for the physical VMEM layout: sublanes rounded to
    the dtype packing (8 for f32, 16 for bf16, 32 for int8) and lanes to 128.
    """
    def sub(itemsize):
        return 8 * max(1, 4 // itemsize)

    sx, sw = sub(x_itemsize), sub(w_itemsize)

    # Grid-invariant weights/biases.  The pipeline still gives them two VMEM
    # buffers (constant index_map => DMA'd once, but double-allocated).
    # TODO(synk): pipeline_mode=pl.Buffered(1) (or scratch + one-shot DMA)
    # would drop the 2x for large real-model channel counts.
    wgt = 2 * w_itemsize * (
        _round_up(cr_pad + cout, sw) * _round_up(cin, 128)
        + _round_up(cin, sw) * _round_up(cr_pad, 128)
        + _round_up(cout, sw) * _round_up(cin, 128))
    wgt += 2 * 4 * 128 * (_round_up(cr_pad + cout, 8)
                          + _round_up(cin, 8) + _round_up(cout, 8))

    def need(ts):
        io = 2 * ts * x_itemsize * (_round_up(cin, sx) + _round_up(cout, sx))
        tmp = ts * 4 * (2 * _round_up(cr_pad, 8)
                        + 3 * _round_up(cout, 8) + 2 * _round_up(cin, 8))
        return wgt + io + tmp

    if hw < 128:
        # Full-extent lane block (block dim == array dim is always legal).
        return hw, need(_round_up(hw, 128))

    ts = min(_round_up(target, 128), _round_up(hw, 128))
    # Keep >= 2 total grid steps when possible so the "parallel" axes actually
    # shard across v7x's two TensorCores (no effect on v5e/v6e).
    if n_batch == 1 and hw > 128:
        ts = min(ts, _round_up((hw + 1) // 2, 128))
    while ts > 128 and need(ts) > budget_bytes:
        ts = _round_up(ts // 2, 128)
    return ts, need(ts)


@functools.partial(jax.jit, static_argnames=("tile_pixels", "vmem_budget_bytes"))
def _output_se_jit(x_nchw, params, *, tile_pixels, vmem_budget_bytes):
    w1, b1, w2, b2, wm, bm, wp, bp = params
    N, Cin, H, W = x_nchw.shape
    Cr = w1.shape[0]
    Cout = wm.shape[0]
    HW = H * W

    # Pad the SE hidden width to an f32 sublane-tile boundary so the fused
    # result splits on a tile boundary.  Padded W1 rows / biases are zero and
    # the matching padded W2 columns are zero, so results are unchanged.
    cr_pad = max(8, _round_up(Cr, 8))

    w1p = jnp.concatenate(
        [jnp.pad(w1, ((0, cr_pad - Cr), (0, 0))), wp], axis=0)       # (cr_pad+Cout, Cin)
    b1p = jnp.concatenate(
        [jnp.pad(b1, ((0, cr_pad - Cr), (0, 0))), bp],
        axis=0).astype(jnp.float32)                                  # (cr_pad+Cout, 1)
    w2p = jnp.pad(w2, ((0, 0), (0, cr_pad - Cr)))                    # (Cin, cr_pad)
    b2f = b2.astype(jnp.float32)                                     # (Cin, 1)
    bmf = bm.astype(jnp.float32)                                     # (Cout, 1)

    # Free reshape (contiguous trailing dims): stays in NCHW, no transpose.
    x = x_nchw.reshape(N, Cin, HW)

    ts, need = _pick_tile_pixels(
        tile_pixels, HW, N, Cin, cr_pad, Cout,
        jnp.dtype(x.dtype).itemsize, jnp.dtype(w1.dtype).itemsize,
        vmem_budget_bytes)
    vmem_limit = int(min(vmem_budget_bytes, max(2 * need, 32 * 2 ** 20)))

    grid = (N, pl.cdiv(HW, ts))

    out = pl.pallas_call(
        functools.partial(_output_se_kernel, cr_pad=cr_pad),
        out_shape=jax.ShapeDtypeStruct((N, Cout, HW), x.dtype),
        grid_spec=pltpu.PrefetchScalarGridSpec(
            num_scalar_prefetch=0,
            grid=grid,
            in_specs=[
                pl.BlockSpec((None, Cin, ts), lambda n, s: (n, 0, s)),        # x
                pl.BlockSpec((cr_pad + Cout, Cin), lambda n, s: (0, 0)),      # [W1;Wp]
                pl.BlockSpec((cr_pad + Cout, 1), lambda n, s: (0, 0)),        # [b1;bp]
                pl.BlockSpec((Cin, cr_pad), lambda n, s: (0, 0)),             # W2
                pl.BlockSpec((Cin, 1), lambda n, s: (0, 0)),                  # b2
                pl.BlockSpec((Cout, Cin), lambda n, s: (0, 0)),               # Wm
                pl.BlockSpec((Cout, 1), lambda n, s: (0, 0)),                 # bm
            ],
            out_specs=pl.BlockSpec((None, Cout, ts), lambda n, s: (n, 0, s)),
        ),
        compiler_params=pltpu.CompilerParams(
            dimension_semantics=("parallel", "parallel"),
            vmem_limit_bytes=vmem_limit,
        ),
    )(x, w1p, b1p, w2p, b2f, wm, bmf)

    return out.reshape(N, Cout, H, W)


def output_se_pallas(x_nchw, params, *, tile_pixels=8192):
    """NCHW forward matching the PyTorch OutputSE module."""
    return _output_se_jit(x_nchw, params, tile_pixels=tile_pixels,
                          vmem_budget_bytes=_vmem_budget_bytes())


def init_params(key, in_channel, out_channel, reduction, dtype=jnp.float32):
    cr = in_channel // reduction
    keys = jax.random.split(key, 8)
    scale = 0.1
    # PyTorch Conv2d 1x1 weight layout (out_ch, in_ch); biases as (out_ch, 1).
    w1 = (scale * jax.random.normal(keys[0], (cr, in_channel))).astype(dtype)
    b1 = (scale * jax.random.normal(keys[1], (cr, 1))).astype(dtype)
    w2 = (scale * jax.random.normal(keys[2], (in_channel, cr))).astype(dtype)
    b2 = (scale * jax.random.normal(keys[3], (in_channel, 1))).astype(dtype)
    wm = (scale * jax.random.normal(keys[4], (out_channel, in_channel))).astype(dtype)
    bm = (scale * jax.random.normal(keys[5], (out_channel, 1))).astype(dtype)
    wp = (scale * jax.random.normal(keys[6], (out_channel, in_channel))).astype(dtype)
    bp = (scale * jax.random.normal(keys[7], (out_channel, 1))).astype(dtype)
    return (w1, b1, w2, b2, wm, bm, wp, bp)


def output_se_ref(x_nchw, params):
    """Pure-JAX reference of the PyTorch forward (NCHW)."""
    w1, b1, w2, b2, wm, bm, wp, bp = params
    N, Cin, H, W = x_nchw.shape
    x = x_nchw.reshape(N, Cin, H * W).astype(jnp.float32)

    def mish(v):
        return v * jnp.tanh(jax.nn.softplus(v))

    def conv1x1(w, b, v):
        return (jnp.einsum("oi,nip->nop", w.astype(jnp.float32), v)
                + b.astype(jnp.float32)[None])

    h = mish(conv1x1(w1, b1, x))
    s = jax.nn.sigmoid(conv1x1(w2, b2, h))
    g = s * x
    out = mish(conv1x1(wm, bm, g)) + conv1x1(wp, bp, x)
    return out.reshape(N, wm.shape[0], H, W).astype(x_nchw.dtype)


if __name__ == "__main__":
    key = jax.random.PRNGKey(0)
    k_x, k_p = jax.random.split(key)

    N, Cin, Cout, reduction, S = 2, 16, 8, 4, 16
    x = jax.random.normal(k_x, (N, Cin, S, S), dtype=jnp.float32)
    params = init_params(k_p, Cin, Cout, reduction)

    out = jax.block_until_ready(output_se_pallas(x, params))
    ref = output_se_ref(x, params)

    assert out.shape == (N, Cout, S, S)
    err = float(jnp.max(jnp.abs(out.astype(jnp.float32) - ref.astype(jnp.float32))))
    assert err < 1e-4, f"max err {err}"

    print("KERNEL_OK")
</pallas_src>

<mosaic_0001>
module attributes {stable_mosaic.version = 11 : i64} {
  func.func @_output_se_kernel(%arg0: i32, %arg1: i32, %arg2: memref<1x16x256xf32, #tpu.memory_space<vmem>>, %arg3: memref<16x16xf32, #tpu.memory_space<vmem>>, %arg4: memref<16x1xf32, #tpu.memory_space<vmem>>, %arg5: memref<16x8xf32, #tpu.memory_space<vmem>>, %arg6: memref<16x1xf32, #tpu.memory_space<vmem>>, %arg7: memref<8x16xf32, #tpu.memory_space<vmem>>, %arg8: memref<8x1xf32, #tpu.memory_space<vmem>>, %arg9: memref<1x8x256xf32, #tpu.memory_space<vmem>>) attributes {dimension_semantics = [#tpu.dimension_semantics<parallel>, #tpu.dimension_semantics<parallel>], iteration_bounds = array<i64: 2, 1>, scalar_prefetch = 0 : i64, scratch_operands = 0 : i64, tpu.core_type = #tpu.core_type<tc>, window_params = [{transform_indices = @transform_0, window_bounds = array<i64: 1, 16, 256>}, {pipeline_mode = #tpu.pipeline_mode<synchronous>, transform_indices = @transform_1, window_bounds = array<i64: 16, 16>}, {pipeline_mode = #tpu.pipeline_mode<synchronous>, transform_indices = @transform_2, window_bounds = array<i64: 16, 1>}, {pipeline_mode = #tpu.pipeline_mode<synchronous>, transform_indices = @transform_3, window_bounds = array<i64: 16, 8>}, {pipeline_mode = #tpu.pipeline_mode<synchronous>, transform_indices = @transform_4, window_bounds = array<i64: 16, 1>}, {pipeline_mode = #tpu.pipeline_mode<synchronous>, transform_indices = @transform_5, window_bounds = array<i64: 8, 16>}, {pipeline_mode = #tpu.pipeline_mode<synchronous>, transform_indices = @transform_6, window_bounds = array<i64: 8, 1>}, {transform_indices = @transform_7, window_bounds = array<i64: 1, 8, 256>}]} {
    %c0 = arith.constant 0 : index
    %c0_0 = arith.constant 0 : index
    %c0_1 = arith.constant 0 : index
    %0 = vector.load %arg2[%c0, %c0_0, %c0_1] : memref<1x16x256xf32, #tpu.memory_space<vmem>>, vector<1x16x256xf32>
    %1 = vector.shape_cast %0 : vector<1x16x256xf32> to vector<16x256xf32>
    %c0_2 = arith.constant 0 : index
    %c0_3 = arith.constant 0 : index
    %2 = vector.load %arg3[%c0_2, %c0_3] : memref<16x16xf32, #tpu.memory_space<vmem>>, vector<16x16xf32>
    %cst = arith.constant dense<0.000000e+00> : vector<16x256xf32>
    %3 = tpu.matmul %2, %1, %cst {dimension_numbers = #tpu.dot_dimension_numbers<[1], [0], [0], [1], [0, 0, 1, 1], [], []>} : vector<16x16xf32>, vector<16x256xf32>, vector<16x256xf32> -> vector<16x256xf32>
    %c0_4 = arith.constant 0 : index
    %c0_5 = arith.constant 0 : index
    %4 = vector.load %arg4[%c0_4, %c0_5] : memref<16x1xf32, #tpu.memory_space<vmem>>, vector<16x1xf32>
    %5 = vector.broadcast %4 : vector<16x1xf32> to vector<16x256xf32>
    %6 = arith.addf %3, %5 : vector<16x256xf32>
    %7 = vector.extract_strided_slice %6 {offsets = [0, 0], sizes = [8, 256], strides = [1, 1]} : vector<16x256xf32> to vector<8x256xf32>
    %cst_6 = arith.constant 0.000000e+00 : f32
    %8 = vector.broadcast %cst_6 : f32 to vector<8x256xf32>
    %9 = arith.maximumf %7, %8 : vector<8x256xf32>
    %10 = vector.broadcast %cst_6 : f32 to vector<8x256xf32>
    %11 = arith.subf %7, %10 : vector<8x256xf32>
    %12 = arith.cmpf one, %11, %11 : vector<8x256xf32>
    %13 = vector.broadcast %cst_6 : f32 to vector<8x256xf32>
    %14 = arith.addf %7, %13 : vector<8x256xf32>
    %15 = math.absf %11 : vector<8x256xf32>
    %cst_7 = arith.constant 0.000000e+00 : f32
    %16 = vector.broadcast %cst_7 : f32 to vector<8x256xf32>
    %17 = arith.subf %16, %15 : vector<8x256xf32>
    %18 = math.exp %17 : vector<8x256xf32>
    %19 = math.log1p %18 : vector<8x256xf32>
    %20 = arith.addf %9, %19 : vector<8x256xf32>
    %21 = arith.select %12, %14, %20 : vector<8x256xi1>, vector<8x256xf32>
    %22 = math.tanh %21 : vector<8x256xf32>
    %23 = arith.mulf %7, %22 : vector<8x256xf32>
    %24 = vector.extract_strided_slice %6 {offsets = [8, 0], sizes = [8, 256], strides = [1, 1]} : vector<16x256xf32> to vector<8x256xf32>
    %c0_8 = arith.constant 0 : index
    %c0_9 = arith.constant 0 : index
    %25 = vector.load %arg5[%c0_8, %c0_9] : memref<16x8xf32, #tpu.memory_space<vmem>>, vector<16x8xf32>
    %cst_10 = arith.constant dense<0.000000e+00> : vector<16x256xf32>
    %26 = tpu.matmul %25, %23, %cst_10 {dimension_numbers = #tpu.dot_dimension_numbers<[1], [0], [0], [1], [0, 0, 1, 1], [], []>} : vector<16x8xf32>, vector<8x256xf32>, vector<16x256xf32> -> vector<16x256xf32>
    %c0_11 = arith.constant 0 : index
    %c0_12 = arith.constant 0 : index
    %27 = vector.load %arg6[%c0_11, %c0_12] : memref<16x1xf32, #tpu.memory_space<vmem>>, vector<16x1xf32>
    %28 = vector.broadcast %27 : vector<16x1xf32> to vector<16x256xf32>
    %29 = arith.addf %26, %28 : vector<16x256xf32>
    %30 = arith.negf %29 : vector<16x256xf32>
    %31 = math.exp %30 : vector<16x256xf32>
    %cst_13 = arith.constant 1.000000e+00 : f32
    %32 = vector.broadcast %cst_13 : f32 to vector<16x256xf32>
    %33 = arith.addf %32, %31 : vector<16x256xf32>
    %34 = arith.divf %32, %33 : vector<16x256xf32>
    %35 = arith.mulf %34, %1 : vector<16x256xf32>
    %c0_14 = arith.constant 0 : index
    %c0_15 = arith.constant 0 : index
    %36 = vector.load %arg7[%c0_14, %c0_15] : memref<8x16xf32, #tpu.memory_space<vmem>>, vector<8x16xf32>
    %cst_16 = arith.constant dense<0.000000e+00> : vector<8x256xf32>
    %37 = tpu.matmul %36, %35, %cst_16 {dimension_numbers = #tpu.dot_dimension_numbers<[1], [0], [0], [1], [0, 0, 1, 1], [], []>} : vector<8x16xf32>, vector<16x256xf32>, vector<8x256xf32> -> vector<8x256xf32>
    %c0_17 = arith.constant 0 : index
    %c0_18 = arith.constant 0 : index
    %38 = vector.load %arg8[%c0_17, %c0_18] : memref<8x1xf32, #tpu.memory_space<vmem>>, vector<8x1xf32>
    %39 = vector.broadcast %38 : vector<8x1xf32> to vector<8x256xf32>
    %40 = arith.addf %37, %39 : vector<8x256xf32>
    %cst_19 = arith.constant 0.000000e+00 : f32
    %41 = vector.broadcast %cst_19 : f32 to vector<8x256xf32>
    %42 = arith.maximumf %40, %41 : vector<8x256xf32>
    %43 = vector.broadcast %cst_19 : f32 to vector<8x256xf32>
    %44 = arith.subf %40, %43 : vector<8x256xf32>
    %45 = arith.cmpf one, %44, %44 : vector<8x256xf32>
    %46 = vector.broadcast %cst_19 : f32 to vector<8x256xf32>
    %47 = arith.addf %40, %46 : vector<8x256xf32>
    %48 = math.absf %44 : vector<8x256xf32>
    %cst_20 = arith.constant 0.000000e+00 : f32
    %49 = vector.broadcast %cst_20 : f32 to vector<8x256xf32>
    %50 = arith.subf %49, %48 : vector<8x256xf32>
    %51 = math.exp %50 : vector<8x256xf32>
    %52 = math.log1p %51 : vector<8x256xf32>
    %53 = arith.addf %42, %52 : vector<8x256xf32>
    %54 = arith.select %45, %47, %53 : vector<8x256xi1>, vector<8x256xf32>
    %55 = math.tanh %54 : vector<8x256xf32>
    %56 = arith.mulf %40, %55 : vector<8x256xf32>
    %57 = arith.addf %56, %24 : vector<8x256xf32>
    %c0_21 = arith.constant 0 : index
    %c0_22 = arith.constant 0 : index
    %c0_23 = arith.constant 0 : index
    %58 = vector.load %arg9[%c0_21, %c0_22, %c0_23] : memref<1x8x256xf32, #tpu.memory_space<vmem>>, vector<1x8x256xf32>
    %59 = vector.shape_cast %58 : vector<1x8x256xf32> to vector<8x256xf32>
    %60 = vector.shape_cast %57 : vector<8x256xf32> to vector<1x8x256xf32>
    tpu.vector_store %arg9[%c0_21, %c0_22, %c0_23], %60 {strides = array<i32>} : memref<1x8x256xf32, #tpu.memory_space<vmem>>, vector<1x8x256xf32>,
    return
  }
  func.func @transform_0(%arg0: i32, %arg1: i32) -> (i32, i32, i32) {
    %c0_i32 = arith.constant 0 : i32
    %c0_i32_0 = arith.constant 0 : i32
    return %arg0, %c0_i32, %arg1 : i32, i32, i32
  }
  func.func @transform_1(%arg0: i32, %arg1: i32) -> (i32, i32) {
    %c0_i32 = arith.constant 0 : i32
    %c0_i32_0 = arith.constant 0 : i32
    %c0_i32_1 = arith.constant 0 : i32
    return %c0_i32, %c0_i32_0 : i32, i32
  }
  func.func @transform_2(%arg0: i32, %arg1: i32) -> (i32, i32) {
    %c0_i32 = arith.constant 0 : i32
    %c0_i32_0 = arith.constant 0 : i32
    %c0_i32_1 = arith.constant 0 : i32
    return %c0_i32, %c0_i32_0 : i32, i32
  }
  func.func @transform_3(%arg0: i32, %arg1: i32) -> (i32, i32) {
    %c0_i32 = arith.constant 0 : i32
    %c0_i32_0 = arith.constant 0 : i32
    %c0_i32_1 = arith.constant 0 : i32
    return %c0_i32, %c0_i32_0 : i32, i32
  }
  func.func @transform_4(%arg0: i32, %arg1: i32) -> (i32, i32) {
    %c0_i32 = arith.constant 0 : i32
    %c0_i32_0 = arith.constant 0 : i32
    %c0_i32_1 = arith.constant 0 : i32
    return %c0_i32, %c0_i32_0 : i32, i32
  }
  func.func @transform_5(%arg0: i32, %arg1: i32) -> (i32, i32) {
    %c0_i32 = arith.constant 0 : i32
    %c0_i32_0 = arith.constant 0 : i32
    %c0_i32_1 = arith.constant 0 : i32
    return %c0_i32, %c0_i32_0 : i32, i32
  }
  func.func @transform_6(%arg0: i32, %arg1: i32) -> (i32, i32) {
    %c0_i32 = arith.constant 0 : i32
    %c0_i32_0 = arith.constant 0 : i32
    %c0_i32_1 = arith.constant 0 : i32
    return %c0_i32, %c0_i32_0 : i32, i32
  }
  func.func @transform_7(%arg0: i32, %arg1: i32) -> (i32, i32, i32) {
    %c0_i32 = arith.constant 0 : i32
    %c0_i32_0 = arith.constant 0 : i32
    return %arg0, %c0_i32, %arg1 : i32, i32, i32
  }
}

</mosaic_0001>

<bundles_post_ra>
// kernel: _output_se_jit.1
= control target key start
LH: loop header
LB: loop body
LE: loop exit
PB: predicated region body
PF: predicated region fallthrough
CT: control target
= control target key end

     0   :  { %s962_s24 = smov 0   ;;  %s964_s25 = smov 0   ;;  %s1059_s0 = inlined_call_operand.vmem [shape: f32[2,16,256], index: 0, kind: input, shape index: {}]   ;;  %s1060_s1 = inlined_call_operand.vmem [shape: f32[16,16], index: 1, kind: input, shape index: {}]   ;;  %s1061_s2 = inlined_call_operand.vmem [shape: f32[16,1], index: 2, kind: input, shape index: {}]   ;;  %s1062_s3 = inlined_call_operand.vmem [shape: f32[16,8], index: 3, kind: input, shape index: {}]   ;;  %s1063_s4 = inlined_call_operand.vmem [shape: f32[16,1], index: 4, kind: input, shape index: {}]   ;;  %s1064_s5 = inlined_call_operand.vmem [shape: f32[8,16], index: 5, kind: input, shape index: {}]   ;;  %s1065_s6 = inlined_call_operand.vmem [shape: f32[8,1], index: 6, kind: input, shape index: {}]   ;;  %s1066_s7 = inlined_call_operand.vmem [shape: f32[2,8,256], index: 7, kind: output, shape index: {}]  }
   0x1   :  { %s966_s26 = smov 0  }
   0x2 LB: > { %s29_s27 = sadd.s32 1, %s914_s25  ;;  %p802_p0 = scmp.ge.s32.totalorder %s918_s26, 1  ;;  %s918_s26 = sphi %s966_s26, %s17_s26   ;;  %s914_s25 = sphi %s964_s25, %s1068_s25   ;;  %s910_s24 = sphi %s962_s24, %s1067_s24  }
   0x3   : > { %p31_p1 = scmp.ge.s32.totalorder %s29_s27, 2  ;;  %p258_p2 = scmp.lt.s32.totalorder %s918_s26, 3 }
   0x5   : > { %s1070_s27 = smov (%p31_p1, %s29_s27), 0  ;;  %p259_p3 = pnand %p802_p0, %p258_p2 }
   0x6   : > { %p299_p4 = scmp.lt.s32.totalorder (!%p259_p3), %s910_s24, 1  ;;  %v920_v0 = vmov (!%p259_p3), 0.0   ;;  %v921_v1 = vmov (!%p259_p3), 0   ;;  %v324_v2 = vld [vmem:[%s1061_s2] sm:$0xff] (!%p259_p3)  ;;  %v325_v9 = vld [vmem:[%s1061_s2 + $0x8] sm:$0xff] (!%p259_p3)  ;;  %vm336_vm0 = vcmask (!%p259_p3), 130048  }
   0x7   : > { %262 = sbr.rel (%p259_p3) target bundleno = 810 (0x32a), region = 48  ;;  %407 = vmatprep.mubr.f32.mxu0 (!%p259_p3), %v920_v0  ;;  %854 = vset.pattern.permute.xlu0 (!%p259_p3), %v921_v1  ;;  %v462_v3 = vld [vmem:[%s1063_s4] sm:$0xff] (!%p259_p3)  ;;  %v323_v12 = vld [vmem:[%s1060_s1 + $0x8] sm:$0xff] (!%p259_p3)  ;;  %vm474_vm5 = vcmask (!%p259_p3), 64512  }
   0x8   : > { %328 = vperm.xlu0 (!%p259_p3), %854, %v324_v2   ;;  %545 = vmatprep.mubr.f32.mxu1 (!%p259_p3), %v920_v0  ;;  %v322_v11 = vld [vmem:[%s1060_s1] sm:$0xff] (!%p259_p3)  ;;  %v463_v13 = vld [vmem:[%s1063_s4 + $0x8] sm:$0xff] (!%p259_p3) }
   0x9   : > { %855 = vset.pattern.permute.xlu1 (!%p259_p3), %v921_v1  ;;  %v587_v14 = vld [vmem:[%s1065_s6] sm:$0xff] (!%p259_p3)  ;;  %v461_v57 = vld [vmem:[%s1062_s3 + $0x8] sm:$0xff] (!%p259_p3) }
   0xa   : > { %471 = vperm.xlu1 (!%p259_p3), %855, %v463_v13   ;;  %v460_v56 = vld [vmem:[%s1062_s3] sm:$0xff] (!%p259_p3) }
   0xc   : > { %466 = vperm.xlu0 (!%p259_p3), %854, %v462_v3  }
   0xe   : > { %s1072_s24 = smov (!%p299_p4, %s910_s24), 1  ;;  %590 = vperm.xlu1 %855, %v587_v14  }
   0xf   : > { %s818_s9 = sshll.u32 %s1072_s24, 5  ;;  %s819_s10 = sshll.u32 %s1072_s24, 4 }
  0x10   : > { %s306_s12 = scalar_lea.vmem %s1059_s0, %s818_s9  ;;  %333 = vperm.xlu0 %854, %v325_v9   ;;  %s316_s13 = scalar_lea.vmem %s1066_s7, %s819_s10 }
  0x11   : > { %v994_v4 = vld [vmem:[%s306_s12 + $0x8] sm:$0xff]  ;;  %v996_v5 = vld [vmem:[%s306_s12 + $0x18] sm:$0xff]  ;;  %v998_v6 = vld [vmem:[%s306_s12] sm:$0xff] }
  0x12   : > { %v820_v7 = vpack.c.bf16 %v996_v5, %v994_v4  ;;  %v1002_v8 = vld [vmem:[%s306_s12 + $0x10] sm:$0xff] }
  0x13   : > { %v822_v10 = vpack.c.bf16 %v1002_v8, %v998_v6 }
  0x14   : > { %821 = vmatprep.subr.bf16.mxu0 %v820_v7 }
  0x15   : > { %823 = vmatpush1.bf16.msra.mxu0 %v822_v10 }
  0x18   : > { %807 = vmatmul.mubr.msk.f32.vlgmr.msra.gmra.mrb[0].mxu0 %vm336_vm0, %v322_v11 }
  0x19   : > { %413 = vmatprep.mubr.f32.mxu0 %v920_v0 }
  0x1c   : > { %808 = vmatmul.mubr.msk.f32.gmra.mrb[2].mxu0 %vm336_vm0, %v323_v12 }
  0x87   : > { %v329_v15 = vpop.permute.xlu0 %328 }
  0x89   : > { %v472_v1 = vpop.permute.xlu1 %471 }
  0x8b   : > { %v467_v58 = vpop.permute.xlu0 %466 }
  0xeb   : > { %v409_v16 = vpop.f32.mrb[0].mxu0 }
  0xec   : > { %v410_v17 = vadd.f32 %v409_v16, %v329_v15  ;;  %v411_v18 = vpop.f32.mrb[1].mxu0 }
  0xed   : > { %v412_v19 = vadd.f32 %v411_v18, %v329_v15 }
  0xee   : > { %v426_v20 = vand.u32 2147483647, %v410_v17  ;;  %v420_v42 = vmax.f32 %v410_v17, 0.0  ;;  %vm422_vm3 = vcmp.ne.f32.partialorder %v410_v17, %v410_v17 }
  0xef   : > { %v427_v21 = vand.u32 2147483647, %v412_v19  ;;  %v1024_v22 = vpop.f32.mrb[2].mxu0  ;;  %v421_v46 = vmax.f32 %v412_v19, 0.0  ;;  %vm423_vm4 = vcmp.ne.f32.partialorder %v412_v19, %v412_v19 }
  0xf0   : > { %v428_v23 = vsub.f32 0.0, %v426_v20  ;;  %v1026_v24 = vpop.f32.mrb[3].mxu0 }
  0xf1   : > { %v429_v25 = vsub.f32 0.0, %v427_v21 }
  0xf2   : > { %v430_v26 = vmul.f32 1.442695, %v428_v23 }
  0xf3   : > { %v432_v27 = vmul.f32 1.442695, %v429_v25 }
  0xf4   : > { %856 = vpow2.f32 %v430_v26 }
  0xf5   : > { %858 = vpow2.f32 %v432_v27 }
  0xfe   : > { %v857_v28 = vpop.eup %856 }
  0xff   : > { %v859_v29 = vpop.eup %858  ;;  %v434_v30 = vadd.f32 1.0, %v857_v28  ;;  %v437_v32 = vmul.f32 -0.5, %v857_v28  ;;  %v440_v35 = vand.u32 2147483647, %v857_v28 }
 0x100   : > { %v443_v31 = vadd.f32 1.0, %v859_v29  ;;  %v446_v33 = vmul.f32 -0.5, %v859_v29  ;;  %v449_v37 = vand.u32 2147483647, %v859_v29 }
 0x101   : > { %860 = vlog2.f32 %v434_v30  ;;  %v438_v34 = vadd.f32 1.0, %v437_v32  ;;  %vm441_vm1 = vcmp.lt.f32.partialorder %v440_v35, 0.0004427343  ;;  %v586_v32 = vld [vmem:[%s1064_s5] sm:$0xff] }
 0x102   : > { %862 = vlog2.f32 %v443_v31  ;;  %v447_v36 = vadd.f32 1.0, %v446_v33  ;;  %vm450_vm2 = vcmp.lt.f32.partialorder %v449_v37, 0.0004427343  ;;  %v591_v33 = vpop.permute.xlu1 %590 }
 0x103   : > { %v439_v41 = vmul.f32 %v857_v28, %v438_v34 }
 0x104   : > { %v448_v44 = vmul.f32 %v859_v29, %v447_v36 }
 0x10b   : > { %v861_v38 = vpop.eup %860 }
 0x10c   : > { %v863_v39 = vpop.eup %862  ;;  %v436_v40 = vmul.f32 0.6931472, %v861_v38 }
 0x10d   : > { %v445_v43 = vmul.f32 0.6931472, %v863_v39 }
 0x10e   : > { %v442_v45 = vsel %vm441_vm1, %v439_v41, %v436_v40 }
 0x10f   : > { %v452_v47 = vadd.f32 %v442_v45, %v420_v42  ;;  %v451_v48 = vsel %vm450_vm2, %v448_v44, %v445_v43 }
 0x110   : > { %v453_v49 = vadd.f32 %v451_v48, %v421_v46 }
 0x111   : > { %v454_v50 = vsel %vm422_vm3, %v410_v17, %v452_v47 }
 0x112   : > { %v455_v51 = vsel %vm423_vm4, %v412_v19, %v453_v49  ;;  %864 = vtanh.f32 %v454_v50 }
 0x113   : > { %866 = vtanh.f32 %v455_v51 }
 0x11c   : > { %v865_v52 = vpop.eup %864 }
 0x11d   : > { %v867_v53 = vpop.eup %866  ;;  %v458_v55 = vmul.f32 %v865_v52, %v410_v17 }
 0x11e   : > { %v459_v54 = vmul.f32 %v867_v53, %v412_v19 }
 0x120   : > { %481 = vmatprep.subr.mxu1 %v459_v54 }
 0x121   : > { %482 = vmatpush1.msra.mxu1 %v458_v55 }
 0x122   : > { %809 = vmatmul.mubr.msk.f32.vlgmr.msra.gmra.mrb[0].mxu1 %vm474_vm5, %v460_v56 }
 0x123   : > { %551 = vmatprep.mubr.f32.mxu1 %v920_v0 }
 0x126   : > { %810 = vmatmul.mubr.msk.f32.gmra.mrb[2].mxu1 %vm474_vm5, %v461_v57 }
 0x127   : > { %660 = vmatprep.mubr.f32.mxu1 %v920_v0 }
 0x1f5   : > { %v547_v59 = vpop.f32.mrb[0].mxu1 }
 0x1f6   : > { %v548_v60 = vadd.f32 %v547_v59, %v467_v58  ;;  %v549_v61 = vpop.f32.mrb[1].mxu1 }
 0x1f7   : > { %v550_v62 = vadd.f32 %v549_v61, %v467_v58 }
 0x1f8   : > { %v811_v63 = vmul.f32 -1.442695, %v548_v60 }
 0x1f9   : > { %v812_v2 = vmul.f32 -1.442695, %v550_v62  ;;  %v553_v3 = vpop.f32.mrb[2].mxu1 }
 0x1fa   : > { %868 = vpow2.f32 %v811_v63  ;;  %v554_v7 = vadd.f32 %v553_v3, %v472_v1  ;;  %v555_v9 = vpop.f32.mrb[3].mxu1 }
 0x1fb   : > { %870 = vpow2.f32 %v812_v2  ;;  %v556_v10 = vadd.f32 %v555_v9, %v472_v1  ;;  %v334_v2 = vpop.permute.xlu0 %333 }
 0x1fc   : > { %v813_v11 = vmul.f32 -1.442695, %v554_v7  ;;  %v416_v7 = vadd.f32 %v1024_v22, %v334_v2 }
 0x1fd   : > { %v814_v12 = vmul.f32 -1.442695, %v556_v10  ;;  %v418_v10 = vadd.f32 %v1026_v24, %v334_v2 }
 0x1fe   : > { %872 = vpow2.f32 %v813_v11 }
 0x1ff   : > { %874 = vpow2.f32 %v814_v12 }
 0x204   : > { %v869_v13 = vpop.eup %868 }
 0x205   : > { %v871_v0 = vpop.eup %870  ;;  %v570_v14 = vadd.f32 1.0, %v869_v13 }
 0x206   : > { %v571_v15 = vadd.f32 1.0, %v871_v0 }
 0x207   : > { %876 = vrcp.f32 %v570_v14 }
 0x208   : > { %v873_v16 = vpop.eup %872  ;;  %878 = vrcp.f32 %v571_v15 }
 0x209   : > { %v875_v17 = vpop.eup %874  ;;  %v572_v18 = vadd.f32 1.0, %v873_v16 }
 0x20a   : > { %v573_v19 = vadd.f32 1.0, %v875_v17 }
 0x20b   : > { %880 = vrcp.f32 %v572_v18 }
 0x20c   : > { %882 = vrcp.f32 %v573_v19 }
 0x211   : > { %v877_v20 = vpop.eup %876 }
 0x212   : > { %v879_v21 = vpop.eup %878  ;;  %v582_v26 = vmul.f32 %v877_v20, %v998_v6 }
 0x213   : > { %v583_v28 = vmul.f32 %v879_v21, %v994_v4 }
 0x215   : > { %v881_v23 = vpop.eup %880 }
 0x216   : > { %v883_v25 = vpop.eup %882  ;;  %v584_v27 = vmul.f32 %v881_v23, %v1002_v8 }
 0x217   : > { %v585_v29 = vmul.f32 %v883_v25, %v996_v5 }
 0x218   : > { %v826_v30 = vpack.c.bf16 %v584_v27, %v582_v26 }
 0x219   : > { %v824_v31 = vpack.c.bf16 %v585_v29, %v583_v28 }
 0x21b   : > { %825 = vmatprep.subr.bf16.mxu1 %v824_v31 }
 0x21c   : > { %827 = vmatpush1.bf16.msra.mxu1 %v826_v30 }
 0x21f   : > { %815 = vmatmul.mubr.msk.f32.vlgmr.msra.gmra.mrb[4].mxu1 %vm336_vm0, %v586_v32 }
 0x2f2   : > { %v662_v34 = vpop.f32.mrb[4].mxu1 }
 0x2f3   : > { %v663_v35 = vadd.f32 %v662_v34, %v591_v33  ;;  %v664_v6 = vpop.f32.mrb[5].mxu1 }
 0x2f4   : > { %v665_v36 = vadd.f32 %v664_v6, %v591_v33 }
 0x2f5   : > { %v673_v8 = vand.u32 2147483647, %v663_v35  ;;  %v667_v54 = vmax.f32 %v663_v35, 0.0  ;;  %vm669_vm8 = vcmp.ne.f32.partialorder %v663_v35, %v663_v35 }
 0x2f6   : > { %v674_v37 = vand.u32 2147483647, %v665_v36  ;;  %v668_v58 = vmax.f32 %v665_v36, 0.0  ;;  %vm670_vm9 = vcmp.ne.f32.partialorder %v665_v36, %v665_v36 }
 0x2f7   : > { %v675_v4 = vsub.f32 0.0, %v673_v8 }
 0x2f8   : > { %v676_v38 = vsub.f32 0.0, %v674_v37 }
 0x2f9   : > { %v677_v5 = vmul.f32 1.442695, %v675_v4 }
 0x2fa   : > { %v679_v39 = vmul.f32 1.442695, %v676_v38 }
 0x2fb   : > { %884 = vpow2.f32 %v677_v5 }
 0x2fc   : > { %886 = vpow2.f32 %v679_v39 }
 0x305   : > { %v885_v40 = vpop.eup %884 }
 0x306   : > { %v887_v41 = vpop.eup %886  ;;  %v681_v42 = vadd.f32 1.0, %v885_v40  ;;  %v684_v44 = vmul.f32 -0.5, %v885_v40  ;;  %v687_v47 = vand.u32 2147483647, %v885_v40 }
 0x307   : > { %v690_v43 = vadd.f32 1.0, %v887_v41  ;;  %v693_v45 = vmul.f32 -0.5, %v887_v41  ;;  %v696_v49 = vand.u32 2147483647, %v887_v41 }
 0x308   : > { %888 = vlog2.f32 %v681_v42  ;;  %v685_v46 = vadd.f32 1.0, %v684_v44  ;;  %vm688_vm6 = vcmp.lt.f32.partialorder %v687_v47, 0.0004427343 }
 0x309   : > { %890 = vlog2.f32 %v690_v43  ;;  %v694_v48 = vadd.f32 1.0, %v693_v45  ;;  %vm697_vm7 = vcmp.lt.f32.partialorder %v696_v49, 0.0004427343 }
 0x30a   : > { %v686_v53 = vmul.f32 %v885_v40, %v685_v46 }
 0x30b   : > { %v695_v56 = vmul.f32 %v887_v41, %v694_v48 }
 0x312   : > { %v889_v50 = vpop.eup %888 }
 0x313   : > { %v891_v51 = vpop.eup %890  ;;  %v683_v52 = vmul.f32 0.6931472, %v889_v50 }
 0x314   : > { %v692_v55 = vmul.f32 0.6931472, %v891_v51 }
 0x315   : > { %v689_v57 = vsel %vm688_vm6, %v686_v53, %v683_v52 }
 0x316   : > { %v699_v59 = vadd.f32 %v689_v57, %v667_v54  ;;  %v698_v60 = vsel %vm697_vm7, %v695_v56, %v692_v55 }
 0x317   : > { %v700_v61 = vadd.f32 %v698_v60, %v668_v58 }
 0x318   : > { %v701_v62 = vsel %vm669_vm8, %v663_v35, %v699_v59 }
 0x319   : > { %892 = vtanh.f32 %v701_v62  ;;  %v702_v63 = vsel %vm670_vm9, %v665_v36, %v700_v61 }
 0x31a   : > { %894 = vtanh.f32 %v702_v63 }
 0x323   : > { %v893_v1 = vpop.eup %892 }
 0x324   : > { %v895_v3 = vpop.eup %894  ;;  %v705_v9 = vmul.f32 %v893_v1, %v663_v35 }
 0x325   : > { %v706_v11 = vmul.f32 %v895_v3, %v665_v36 }
 0x326   : > { %v707_v12 = vadd.f32 %v705_v9, %v416_v7 }
 0x327   : > { %v708_v13 = vadd.f32 %v706_v11, %v418_v10 }
 0x328   : > { %709 = vst [vmem:[%s316_s13] sm:$0xff] %v707_v12 }
 0x329   : > { %710 = vst [vmem:[%s316_s13 + $0x8] sm:$0xff] %v708_v13 }
 0x32a PF: > { %s17_s26 = sadd.s32 1, %s918_s26   ;;  %s1067_s24 = smov %s914_s25 }
 0x32b   : > { %p14_p5 = scmp.ge.s32.totalorder %s17_s26, 4   ;;  %s1068_s25 = smov %s1070_s27 }
 0x32d   :  { %16 = sbr.rel (!%p14_p5) target bundleno = 2 (0x2), region = 78 }

</bundles_post_ra>
